<compile_context>
chip_gen: v5e
topology: v5e:2x2
jax: 0.10.0
libtpu: 0.0.40
codegen_flags: <defaults>
</compile_context>

<pallas_src>
import functools

import jax
import jax.numpy as jnp
from jax import lax
from jax.experimental import pallas as pl
from jax.experimental.pallas import tpu as pltpu


def _ia_layer_kernel(x_ref, sa_w_ref, sa_b_ref, w1t_ref, b1_ref, w2_ref, b2_ref,
                     cmask_ref, rmask_ref, out_ref, *, W, K, B_TILE, inv_hw):
    # x_ref:     (B_TILE, C, HWp)  batch tile; channels on sublanes, flat spatial on lanes
    # sa_w_ref:  (C, K*K)          depthwise conv weights (one KxK filter per channel)
    # sa_b_ref:  (C, 1)            depthwise conv bias
    # w1t_ref:   (C, Cm)           1x1 squeeze conv weight, transposed (Cm = C // reduction)
    # b1_ref:    (1, Cm)           squeeze bias
    # w2_ref:    (C, Cm)           1x1 excite conv weight
    # b2_ref:    (C, 1)            excite bias
    # cmask_ref: (K, HWp)          f32 0/1 column-validity masks (one per kw tap)
    # rmask_ref: (K, HWp)          f32 0/1 row-validity masks (one per kh tap)
    # out_ref:   (B_TILE, C, HWp)
    x = x_ref[...].astype(jnp.float32)                    # (B, C, HWp), f32 accumulation
    HWp = x.shape[-1]
    pad = (K - 1) // 2

    # ---- spatial attention: factored-shift depthwise KxK conv (batched) -----
    # Column-shifted, column-masked copies of x (K-1 lane rolls + K-1 mask muls).
    xcols = []
    for kw in range(K):
        dw = kw - pad
        if dw == 0:
            xcols.append(x)
        else:
            xc = pltpu.roll(x, (-dw) % HWp, 2)
            cm = cmask_ref[kw:kw + 1, :][None]            # (1, 1, HWp)
            xcols.append(xc * cm)

    sa = None
    for kh in range(K):
        dh = kh - pad
        # Weighted row-sum over the column copies: pure VALU FMAs.
        rs = None
        for kw in range(K):
            tap = kh * K + kw
            wt = sa_w_ref[:, tap:tap + 1][None]           # (1, C, 1)
            term = wt * xcols[kw]
            rs = term if rs is None else rs + term
        if dh != 0:
            # Shift the whole row-sum by dh*W (single lane roll) + row mask.
            rs = pltpu.roll(rs, (-dh * W) % HWp, 2)
            rm = rmask_ref[kh:kh + 1, :][None]            # (1, 1, HWp)
            rs = rs * rm
        sa = rs if sa is None else sa + rs
    sa = sa + sa_b_ref[...][None]                         # (B, C, HWp)

    # ---- channel attention (global avg pool + squeeze/excite MLP) -----------
    avg = jnp.sum(x, axis=2, keepdims=True) * inv_hw      # (B, C, 1) (padding lanes are 0)

    w1t = w1t_ref[...]                                    # (C, Cm)
    b1 = b1_ref[...]                                      # (1, Cm)
    w2 = w2_ref[...]                                      # (C, Cm)
    b2 = b2_ref[...]                                      # (C, 1)

    # Per-image SE MLP is tiny (C x Cm); unrolled over the batch tile.
    for b in range(B_TILE):
        hidden = jnp.sum(w1t * avg[b], axis=0, keepdims=True) + b1     # (1, Cm)
        hidden = jnp.maximum(hidden, 0.0)
        ca = jnp.sum(w2 * hidden, axis=1, keepdims=True) + b2          # (C, 1)

        # sigmoid via tanh (EUP slot; avoids VALU divide); full-width lane store.
        z = ca + sa[b]                                                 # (C, HWp)
        out_ref[b] = (0.5 * jnp.tanh(0.5 * z) + 0.5).astype(out_ref.dtype)


def _choose_b_tile(n, c, hwp, itemsize):
    """Largest batch tile whose double-buffered in+out blocks fit a ~8 MiB budget,
    preferring >= 2 grid steps (v7x megacore)."""
    budget = 8 * 1024 * 1024
    per_img = max(1, c * hwp * itemsize)
    max_bt = max(1, budget // (4 * per_img))              # 2x in + 2x out buffers
    divisors = [d for d in range(1, n + 1) if n % d == 0 and d <= max_bt]
    if not divisors:
        return 1
    multi = [d for d in divisors if n // d >= 2]
    return max(multi) if multi else max(divisors)


def ia_layer_forward(x, w_du1, b_du1, w_du2, b_du2, w_sa, b_sa,
                     kernel_size=3, use_sa=True, use_ca=True):
    """Forward pass of IALayer (default use_ca=True, use_sa=True branch).

    x:     (N, C, H, W)
    w_du1: (C//r, C, 1, 1),  b_du1: (C//r,)   -- 1x1 squeeze conv
    w_du2: (C, C//r, 1, 1),  b_du2: (C,)      -- 1x1 excite conv
    w_sa:  (C, 1, K, K),     b_sa:  (C,)      -- depthwise KxK conv (groups=C)
    returns (N, C, H, W) = sigmoid(ca + sa)
    """
    if not (use_sa and use_ca):
        # TODO(synk): only the default use_ca=True & use_sa=True branch is implemented
        # (the other branches skip one attention path / change the output).
        raise NotImplementedError("only use_ca=True, use_sa=True is implemented")

    N, C, H, W = x.shape
    K = kernel_size
    Cm = w_du1.shape[0]
    HW = H * W
    HWp = ((HW + 127) // 128) * 128                       # lane-dense (128-aligned) spatial dim
    pad = (K - 1) // 2

    # NCHW kept; contiguous (H, W) -> H*W reshape is free. Pad lanes only if needed.
    x_flat = x.reshape(N, C, HW)
    if HWp != HW:
        x_flat = jnp.pad(x_flat, ((0, 0), (0, 0), (0, HWp - HW)))

    # Precomputed edge-validity masks (tiny, VMEM-resident across all grid steps).
    lane = jnp.arange(HWp, dtype=jnp.int32)
    h_idx = lane // W
    w_idx = lane % W
    in_img = lane < HW
    col_masks = jnp.stack([
        (in_img & (w_idx + (kw - pad) >= 0) & (w_idx + (kw - pad) < W)).astype(jnp.float32)
        for kw in range(K)])                              # (K, HWp)
    row_masks = jnp.stack([
        (in_img & (h_idx + (kh - pad) >= 0) & (h_idx + (kh - pad) < H)).astype(jnp.float32)
        for kh in range(K)])                              # (K, HWp)

    # Tiny parameter re-layouts (KB-sized, done once).
    w1t = jnp.transpose(w_du1.reshape(Cm, C))             # (C, Cm)
    b1 = b_du1.reshape(1, Cm)
    w2 = w_du2.reshape(C, Cm)                             # (C, Cm)
    b2 = b_du2.reshape(C, 1)
    sa_w = w_sa.reshape(C, K * K)                         # (C, K*K)
    sa_b = b_sa.reshape(C, 1)

    B_TILE = _choose_b_tile(N, C, HWp, jnp.dtype(x.dtype).itemsize)
    grid = (N // B_TILE,)

    kernel = functools.partial(_ia_layer_kernel, W=W, K=K, B_TILE=B_TILE,
                               inv_hw=1.0 / float(HW))

    out_flat = pl.pallas_call(
        kernel,
        out_shape=jax.ShapeDtypeStruct((N, C, HWp), x.dtype),
        grid=grid,
        in_specs=[
            pl.BlockSpec((B_TILE, C, HWp), lambda n: (n, 0, 0)),  # x batch tile
            pl.BlockSpec((C, K * K), lambda n: (0, 0)),           # depthwise weights
            pl.BlockSpec((C, 1), lambda n: (0, 0)),               # depthwise bias
            pl.BlockSpec((C, Cm), lambda n: (0, 0)),              # squeeze weight (transposed)
            pl.BlockSpec((1, Cm), lambda n: (0, 0)),              # squeeze bias
            pl.BlockSpec((C, Cm), lambda n: (0, 0)),              # excite weight
            pl.BlockSpec((C, 1), lambda n: (0, 0)),               # excite bias
            pl.BlockSpec((K, HWp), lambda n: (0, 0)),             # column-validity masks
            pl.BlockSpec((K, HWp), lambda n: (0, 0)),             # row-validity masks
        ],
        out_specs=pl.BlockSpec((B_TILE, C, HWp), lambda n: (n, 0, 0)),
        compiler_params=pltpu.CompilerParams(
            dimension_semantics=("parallel",),
            vmem_limit_bytes=32 * 1024 * 1024,
        ),
    )(x_flat, sa_w, sa_b, w1t, b1, w2, b2, col_masks, row_masks)

    if HWp != HW:
        out_flat = out_flat[..., :HW]
    return out_flat.reshape(N, C, H, W)


def _reference_forward(x, w_du1, b_du1, w_du2, b_du2, w_sa, b_sa, K=3):
    p = (K - 1) // 2
    # channel attention
    ca = jnp.mean(x, axis=(2, 3), keepdims=True)
    ca = lax.conv_general_dilated(ca, w_du1, (1, 1), "VALID",
                                  dimension_numbers=("NCHW", "OIHW", "NCHW"))
    ca = jnp.maximum(ca + b_du1.reshape(1, -1, 1, 1), 0.0)
    ca = lax.conv_general_dilated(ca, w_du2, (1, 1), "VALID",
                                  dimension_numbers=("NCHW", "OIHW", "NCHW"))
    ca = ca + b_du2.reshape(1, -1, 1, 1)
    # spatial attention (depthwise conv)
    sa = lax.conv_general_dilated(x, w_sa, (1, 1), ((p, p), (p, p)),
                                  dimension_numbers=("NCHW", "OIHW", "NCHW"),
                                  feature_group_count=x.shape[1])
    sa = sa + b_sa.reshape(1, -1, 1, 1)
    return jax.nn.sigmoid(ca + sa)


if __name__ == "__main__":
    # IALayer(channel=32, kernel_size=3, reduction=16) at small shapes.
    N, C, H, W = 2, 32, 16, 16
    K, reduction = 3, 16
    Cm = C // reduction

    key = jax.random.PRNGKey(0)
    kx, k1, k2, k3, k4, k5, k6 = jax.random.split(key, 7)
    x = jax.random.normal(kx, (N, C, H, W), dtype=jnp.float32)

    def _uniform(k, shape, fan_in):
        bound = 1.0 / (fan_in ** 0.5)
        return jax.random.uniform(k, shape, jnp.float32, -bound, bound)

    # Synthetic parameters with PyTorch Conv2d shapes / init ranges.
    w_du1 = _uniform(k1, (Cm, C, 1, 1), C)           # Conv2d(C, C//r, 1)
    b_du1 = _uniform(k2, (Cm,), C)
    w_du2 = _uniform(k3, (C, Cm, 1, 1), Cm)          # Conv2d(C//r, C, 1)
    b_du2 = _uniform(k4, (C,), Cm)
    w_sa = _uniform(k5, (C, 1, K, K), K * K)         # Conv2d(C, C, K, groups=C)
    b_sa = _uniform(k6, (C,), K * K)

    out = ia_layer_forward(x, w_du1, b_du1, w_du2, b_du2, w_sa, b_sa, kernel_size=K)
    out = jax.block_until_ready(out)

    ref = _reference_forward(x, w_du1, b_du1, w_du2, b_du2, w_sa, b_sa, K=K)
    assert out.shape == (N, C, H, W), out.shape
    assert jnp.allclose(out, ref, atol=1e-5, rtol=1e-5), "mismatch vs reference"

    print("KERNEL_OK")
</pallas_src>

<mosaic_0001>
module attributes {stable_mosaic.version = 11 : i64} {
  func.func @_ia_layer_kernel(%arg0: i32, %arg1: memref<1x32x256xf32, #tpu.memory_space<vmem>>, %arg2: memref<32x9xf32, #tpu.memory_space<vmem>>, %arg3: memref<32x1xf32, #tpu.memory_space<vmem>>, %arg4: memref<32x2xf32, #tpu.memory_space<vmem>>, %arg5: memref<1x2xf32, #tpu.memory_space<vmem>>, %arg6: memref<32x2xf32, #tpu.memory_space<vmem>>, %arg7: memref<32x1xf32, #tpu.memory_space<vmem>>, %arg8: memref<3x256xf32, #tpu.memory_space<vmem>>, %arg9: memref<3x256xf32, #tpu.memory_space<vmem>>, %arg10: memref<1x32x256xf32, #tpu.memory_space<vmem>>) attributes {dimension_semantics = [#tpu.dimension_semantics<parallel>], iteration_bounds = array<i64: 2>, scalar_prefetch = 0 : i64, scratch_operands = 0 : i64, tpu.core_type = #tpu.core_type<tc>, window_params = [{transform_indices = @transform_0, window_bounds = array<i64: 1, 32, 256>}, {pipeline_mode = #tpu.pipeline_mode<synchronous>, transform_indices = @transform_1, window_bounds = array<i64: 32, 9>}, {pipeline_mode = #tpu.pipeline_mode<synchronous>, transform_indices = @transform_2, window_bounds = array<i64: 32, 1>}, {pipeline_mode = #tpu.pipeline_mode<synchronous>, transform_indices = @transform_3, window_bounds = array<i64: 32, 2>}, {pipeline_mode = #tpu.pipeline_mode<synchronous>, transform_indices = @transform_4, window_bounds = array<i64: 1, 2>}, {pipeline_mode = #tpu.pipeline_mode<synchronous>, transform_indices = @transform_5, window_bounds = array<i64: 32, 2>}, {pipeline_mode = #tpu.pipeline_mode<synchronous>, transform_indices = @transform_6, window_bounds = array<i64: 32, 1>}, {pipeline_mode = #tpu.pipeline_mode<synchronous>, transform_indices = @transform_7, window_bounds = array<i64: 3, 256>}, {pipeline_mode = #tpu.pipeline_mode<synchronous>, transform_indices = @transform_8, window_bounds = array<i64: 3, 256>}, {transform_indices = @transform_9, window_bounds = array<i64: 1, 32, 256>}]} {
    %c0 = arith.constant 0 : index
    %c0_0 = arith.constant 0 : index
    %c0_1 = arith.constant 0 : index
    %0 = vector.load %arg1[%c0, %c0_0, %c0_1] : memref<1x32x256xf32, #tpu.memory_space<vmem>>, vector<1x32x256xf32>
    %c1_i32 = arith.constant 1 : i32
    %1 = tpu.dynamic_rotate %0 by %c1_i32 dim 2 : vector<1x32x256xf32>, i32 -> vector<1x32x256xf32>
    %c0_2 = arith.constant 0 : index
    %c0_3 = arith.constant 0 : index
    %2 = vector.load %arg8[%c0_2, %c0_3] : memref<3x256xf32, #tpu.memory_space<vmem>>, vector<1x256xf32>
    %3 = vector.shape_cast %2 : vector<1x256xf32> to vector<1x1x256xf32>
    %4 = vector.broadcast %3 : vector<1x1x256xf32> to vector<1x32x256xf32>
    %5 = arith.mulf %1, %4 : vector<1x32x256xf32>
    %c255_i32 = arith.constant 255 : i32
    %6 = tpu.dynamic_rotate %0 by %c255_i32 dim 2 : vector<1x32x256xf32>, i32 -> vector<1x32x256xf32>
    %c2 = arith.constant 2 : index
    %c0_4 = arith.constant 0 : index
    %7 = vector.load %arg8[%c2, %c0_4] : memref<3x256xf32, #tpu.memory_space<vmem>>, vector<1x256xf32>
    %8 = vector.shape_cast %7 : vector<1x256xf32> to vector<1x1x256xf32>
    %9 = vector.broadcast %8 : vector<1x1x256xf32> to vector<1x32x256xf32>
    %10 = arith.mulf %6, %9 : vector<1x32x256xf32>
    %c0_5 = arith.constant 0 : index
    %c0_6 = arith.constant 0 : index
    %11 = vector.load %arg2[%c0_5, %c0_6] : memref<32x9xf32, #tpu.memory_space<vmem>>, vector<32x1xf32>
    %12 = vector.shape_cast %11 : vector<32x1xf32> to vector<1x32x1xf32>
    %13 = vector.broadcast %12 : vector<1x32x1xf32> to vector<1x32x256xf32>
    %14 = arith.mulf %13, %5 : vector<1x32x256xf32>
    %c0_7 = arith.constant 0 : index
    %c1 = arith.constant 1 : index
    %15 = vector.load %arg2[%c0_7, %c1] : memref<32x9xf32, #tpu.memory_space<vmem>>, vector<32x1xf32>
    %16 = vector.shape_cast %15 : vector<32x1xf32> to vector<1x32x1xf32>
    %17 = vector.broadcast %16 : vector<1x32x1xf32> to vector<1x32x256xf32>
    %18 = arith.mulf %17, %0 : vector<1x32x256xf32>
    %19 = arith.addf %14, %18 : vector<1x32x256xf32>
    %c0_8 = arith.constant 0 : index
    %c2_9 = arith.constant 2 : index
    %20 = vector.load %arg2[%c0_8, %c2_9] : memref<32x9xf32, #tpu.memory_space<vmem>>, vector<32x1xf32>
    %21 = vector.shape_cast %20 : vector<32x1xf32> to vector<1x32x1xf32>
    %22 = vector.broadcast %21 : vector<1x32x1xf32> to vector<1x32x256xf32>
    %23 = arith.mulf %22, %10 : vector<1x32x256xf32>
    %24 = arith.addf %19, %23 : vector<1x32x256xf32>
    %c16_i32 = arith.constant 16 : i32
    %25 = tpu.dynamic_rotate %24 by %c16_i32 dim 2 : vector<1x32x256xf32>, i32 -> vector<1x32x256xf32>
    %c0_10 = arith.constant 0 : index
    %c0_11 = arith.constant 0 : index
    %26 = vector.load %arg9[%c0_10, %c0_11] : memref<3x256xf32, #tpu.memory_space<vmem>>, vector<1x256xf32>
    %27 = vector.shape_cast %26 : vector<1x256xf32> to vector<1x1x256xf32>
    %28 = vector.broadcast %27 : vector<1x1x256xf32> to vector<1x32x256xf32>
    %29 = arith.mulf %25, %28 : vector<1x32x256xf32>
    %c0_12 = arith.constant 0 : index
    %c3 = arith.constant 3 : index
    %30 = vector.load %arg2[%c0_12, %c3] : memref<32x9xf32, #tpu.memory_space<vmem>>, vector<32x1xf32>
    %31 = vector.shape_cast %30 : vector<32x1xf32> to vector<1x32x1xf32>
    %32 = vector.broadcast %31 : vector<1x32x1xf32> to vector<1x32x256xf32>
    %33 = arith.mulf %32, %5 : vector<1x32x256xf32>
    %c0_13 = arith.constant 0 : index
    %c4 = arith.constant 4 : index
    %34 = vector.load %arg2[%c0_13, %c4] : memref<32x9xf32, #tpu.memory_space<vmem>>, vector<32x1xf32>
    %35 = vector.shape_cast %34 : vector<32x1xf32> to vector<1x32x1xf32>
    %36 = vector.broadcast %35 : vector<1x32x1xf32> to vector<1x32x256xf32>
    %37 = arith.mulf %36, %0 : vector<1x32x256xf32>
    %38 = arith.addf %33, %37 : vector<1x32x256xf32>
    %c0_14 = arith.constant 0 : index
    %c5 = arith.constant 5 : index
    %39 = vector.load %arg2[%c0_14, %c5] : memref<32x9xf32, #tpu.memory_space<vmem>>, vector<32x1xf32>
    %40 = vector.shape_cast %39 : vector<32x1xf32> to vector<1x32x1xf32>
    %41 = vector.broadcast %40 : vector<1x32x1xf32> to vector<1x32x256xf32>
    %42 = arith.mulf %41, %10 : vector<1x32x256xf32>
    %43 = arith.addf %38, %42 : vector<1x32x256xf32>
    %44 = arith.addf %29, %43 : vector<1x32x256xf32>
    %c0_15 = arith.constant 0 : index
    %c6 = arith.constant 6 : index
    %45 = vector.load %arg2[%c0_15, %c6] : memref<32x9xf32, #tpu.memory_space<vmem>>, vector<32x1xf32>
    %46 = vector.shape_cast %45 : vector<32x1xf32> to vector<1x32x1xf32>
    %47 = vector.broadcast %46 : vector<1x32x1xf32> to vector<1x32x256xf32>
    %48 = arith.mulf %47, %5 : vector<1x32x256xf32>
    %c0_16 = arith.constant 0 : index
    %c7 = arith.constant 7 : index
    %49 = vector.load %arg2[%c0_16, %c7] : memref<32x9xf32, #tpu.memory_space<vmem>>, vector<32x1xf32>
    %50 = vector.shape_cast %49 : vector<32x1xf32> to vector<1x32x1xf32>
    %51 = vector.broadcast %50 : vector<1x32x1xf32> to vector<1x32x256xf32>
    %52 = arith.mulf %51, %0 : vector<1x32x256xf32>
    %53 = arith.addf %48, %52 : vector<1x32x256xf32>
    %c0_17 = arith.constant 0 : index
    %c8 = arith.constant 8 : index
    %54 = vector.load %arg2[%c0_17, %c8] : memref<32x9xf32, #tpu.memory_space<vmem>>, vector<32x1xf32>
    %55 = vector.shape_cast %54 : vector<32x1xf32> to vector<1x32x1xf32>
    %56 = vector.broadcast %55 : vector<1x32x1xf32> to vector<1x32x256xf32>
    %57 = arith.mulf %56, %10 : vector<1x32x256xf32>
    %58 = arith.addf %53, %57 : vector<1x32x256xf32>
    %c240_i32 = arith.constant 240 : i32
    %59 = tpu.dynamic_rotate %58 by %c240_i32 dim 2 : vector<1x32x256xf32>, i32 -> vector<1x32x256xf32>
    %c2_18 = arith.constant 2 : index
    %c0_19 = arith.constant 0 : index
    %60 = vector.load %arg9[%c2_18, %c0_19] : memref<3x256xf32, #tpu.memory_space<vmem>>, vector<1x256xf32>
    %61 = vector.shape_cast %60 : vector<1x256xf32> to vector<1x1x256xf32>
    %62 = vector.broadcast %61 : vector<1x1x256xf32> to vector<1x32x256xf32>
    %63 = arith.mulf %59, %62 : vector<1x32x256xf32>
    %64 = arith.addf %44, %63 : vector<1x32x256xf32>
    %c0_20 = arith.constant 0 : index
    %c0_21 = arith.constant 0 : index
    %65 = vector.load %arg3[%c0_20, %c0_21] : memref<32x1xf32, #tpu.memory_space<vmem>>, vector<32x1xf32>
    %66 = vector.shape_cast %65 : vector<32x1xf32> to vector<1x32x1xf32>
    %67 = vector.broadcast %66 : vector<1x32x1xf32> to vector<1x32x256xf32>
    %68 = arith.addf %64, %67 : vector<1x32x256xf32>
    %cst = arith.constant dense<0.000000e+00> : vector<1x32xf32>
    %69 = vector.multi_reduction <add>, %0, %cst [2] : vector<1x32x256xf32> to vector<1x32xf32>
    %70 = vector.shape_cast %69 : vector<1x32xf32> to vector<1x32x1xf32>
    %cst_22 = arith.constant 3.906250e-03 : f32
    %71 = vector.broadcast %cst_22 : f32 to vector<1x32x1xf32>
    %72 = arith.mulf %70, %71 : vector<1x32x1xf32>
    %c0_23 = arith.constant 0 : index
    %c0_24 = arith.constant 0 : index
    %73 = vector.load %arg4[%c0_23, %c0_24] : memref<32x2xf32, #tpu.memory_space<vmem>>, vector<32x2xf32>
    %c0_25 = arith.constant 0 : index
    %c0_26 = arith.constant 0 : index
    %74 = vector.load %arg5[%c0_25, %c0_26] : memref<1x2xf32, #tpu.memory_space<vmem>>, vector<1x2xf32>
    %c0_27 = arith.constant 0 : index
    %c0_28 = arith.constant 0 : index
    %75 = vector.load %arg6[%c0_27, %c0_28] : memref<32x2xf32, #tpu.memory_space<vmem>>, vector<32x2xf32>
    %c0_29 = arith.constant 0 : index
    %c0_30 = arith.constant 0 : index
    %76 = vector.load %arg7[%c0_29, %c0_30] : memref<32x1xf32, #tpu.memory_space<vmem>>, vector<32x1xf32>
    %77 = vector.shape_cast %72 : vector<1x32x1xf32> to vector<32x1xf32>
    %78 = vector.broadcast %77 : vector<32x1xf32> to vector<32x2xf32>
    %79 = arith.mulf %73, %78 : vector<32x2xf32>
    %cst_31 = arith.constant dense<0.000000e+00> : vector<2xf32>
    %80 = vector.multi_reduction <add>, %79, %cst_31 [0] : vector<32x2xf32> to vector<2xf32>
    %81 = vector.shape_cast %80 : vector<2xf32> to vector<1x2xf32>
    %82 = arith.addf %81, %74 : vector<1x2xf32>
    %cst_32 = arith.constant 0.000000e+00 : f32
    %83 = vector.broadcast %cst_32 : f32 to vector<1x2xf32>
    %84 = arith.maximumf %82, %83 : vector<1x2xf32>
    %85 = vector.broadcast %84 : vector<1x2xf32> to vector<32x2xf32>
    %86 = arith.mulf %75, %85 : vector<32x2xf32>
    %cst_33 = arith.constant dense<0.000000e+00> : vector<32xf32>
    %87 = vector.multi_reduction <add>, %86, %cst_33 [1] : vector<32x2xf32> to vector<32xf32>
    %88 = vector.shape_cast %87 : vector<32xf32> to vector<32x1xf32>
    %89 = arith.addf %88, %76 : vector<32x1xf32>
    %90 = vector.shape_cast %68 : vector<1x32x256xf32> to vector<32x256xf32>
    %91 = vector.broadcast %89 : vector<32x1xf32> to vector<32x256xf32>
    %92 = arith.addf %91, %90 : vector<32x256xf32>
    %cst_34 = arith.constant 5.000000e-01 : f32
    %93 = vector.broadcast %cst_34 : f32 to vector<32x256xf32>
    %94 = arith.mulf %93, %92 : vector<32x256xf32>
    %95 = math.tanh %94 : vector<32x256xf32>
    %cst_35 = arith.constant 5.000000e-01 : f32
    %96 = vector.broadcast %cst_35 : f32 to vector<32x256xf32>
    %97 = arith.mulf %96, %95 : vector<32x256xf32>
    %cst_36 = arith.constant 5.000000e-01 : f32
    %98 = vector.broadcast %cst_36 : f32 to vector<32x256xf32>
    %99 = arith.addf %97, %98 : vector<32x256xf32>
    %c0_37 = arith.constant 0 : index
    %c0_38 = arith.constant 0 : index
    %c0_39 = arith.constant 0 : index
    %100 = vector.load %arg10[%c0_37, %c0_38, %c0_39] : memref<1x32x256xf32, #tpu.memory_space<vmem>>, vector<1x32x256xf32>
    %101 = vector.shape_cast %100 : vector<1x32x256xf32> to vector<32x256xf32>
    %102 = vector.shape_cast %99 : vector<32x256xf32> to vector<1x32x256xf32>
    tpu.vector_store %arg10[%c0_37, %c0_38, %c0_39], %102 {strides = array<i32>} : memref<1x32x256xf32, #tpu.memory_space<vmem>>, vector<1x32x256xf32>,
    return
  }
  func.func @transform_0(%arg0: i32) -> (i32, i32, i32) {
    %c0_i32 = arith.constant 0 : i32
    %c0_i32_0 = arith.constant 0 : i32
    %c0_i32_1 = arith.constant 0 : i32
    return %arg0, %c0_i32, %c0_i32_0 : i32, i32, i32
  }
  func.func @transform_1(%arg0: i32) -> (i32, i32) {
    %c0_i32 = arith.constant 0 : i32
    %c0_i32_0 = arith.constant 0 : i32
    %c0_i32_1 = arith.constant 0 : i32
    return %c0_i32, %c0_i32_0 : i32, i32
  }
  func.func @transform_2(%arg0: i32) -> (i32, i32) {
    %c0_i32 = arith.constant 0 : i32
    %c0_i32_0 = arith.constant 0 : i32
    %c0_i32_1 = arith.constant 0 : i32
    return %c0_i32, %c0_i32_0 : i32, i32
  }
  func.func @transform_3(%arg0: i32) -> (i32, i32) {
    %c0_i32 = arith.constant 0 : i32
    %c0_i32_0 = arith.constant 0 : i32
    %c0_i32_1 = arith.constant 0 : i32
    return %c0_i32, %c0_i32_0 : i32, i32
  }
  func.func @transform_4(%arg0: i32) -> (i32, i32) {
    %c0_i32 = arith.constant 0 : i32
    %c0_i32_0 = arith.constant 0 : i32
    %c0_i32_1 = arith.constant 0 : i32
    return %c0_i32, %c0_i32_0 : i32, i32
  }
  func.func @transform_5(%arg0: i32) -> (i32, i32) {
    %c0_i32 = arith.constant 0 : i32
    %c0_i32_0 = arith.constant 0 : i32
    %c0_i32_1 = arith.constant 0 : i32
    return %c0_i32, %c0_i32_0 : i32, i32
  }
  func.func @transform_6(%arg0: i32) -> (i32, i32) {
    %c0_i32 = arith.constant 0 : i32
    %c0_i32_0 = arith.constant 0 : i32
    %c0_i32_1 = arith.constant 0 : i32
    return %c0_i32, %c0_i32_0 : i32, i32
  }
  func.func @transform_7(%arg0: i32) -> (i32, i32) {
    %c0_i32 = arith.constant 0 : i32
    %c0_i32_0 = arith.constant 0 : i32
    %c0_i32_1 = arith.constant 0 : i32
    return %c0_i32, %c0_i32_0 : i32, i32
  }
  func.func @transform_8(%arg0: i32) -> (i32, i32) {
    %c0_i32 = arith.constant 0 : i32
    %c0_i32_0 = arith.constant 0 : i32
    %c0_i32_1 = arith.constant 0 : i32
    return %c0_i32, %c0_i32_0 : i32, i32
  }
  func.func @transform_9(%arg0: i32) -> (i32, i32, i32) {
    %c0_i32 = arith.constant 0 : i32
    %c0_i32_0 = arith.constant 0 : i32
    %c0_i32_1 = arith.constant 0 : i32
    return %arg0, %c0_i32, %c0_i32_0 : i32, i32, i32
  }
}

</mosaic_0001>

<bundles_post_ra>
// kernel: tpu_custom_call.1
= control target key start
LH: loop header
LB: loop body
LE: loop exit
PB: predicated region body
PF: predicated region fallthrough
CT: control target
= control target key end

     0   :  { %14 = vsyncpa [#allocation3], 0  ;;  %s1996_s0 = inlined_call_operand.hbm [shape: f32[2,32,256], index: 0, kind: input, shape index: {}]   ;;  %s1997_s1 = inlined_call_operand.vmem [shape: f32[32,9], index: 1, kind: input, shape index: {}]   ;;  %s1998_s2 = inlined_call_operand.vmem [shape: f32[32,1], index: 2, kind: input, shape index: {}]   ;;  %s1999_s3 = inlined_call_operand.vmem [shape: f32[32,2], index: 3, kind: input, shape index: {}]   ;;  %s2000_s4 = inlined_call_operand.vmem [shape: f32[1,2], index: 4, kind: input, shape index: {}]   ;;  %s2001_s5 = inlined_call_operand.vmem [shape: f32[32,2], index: 5, kind: input, shape index: {}]   ;;  %s2002_s6 = inlined_call_operand.vmem [shape: f32[32,1], index: 6, kind: input, shape index: {}]   ;;  %s2003_s7 = inlined_call_operand.vmem [shape: f32[3,256], index: 7, kind: input, shape index: {}]   ;;  %s2004_s8 = inlined_call_operand.vmem [shape: f32[3,256], index: 8, kind: input, shape index: {}]   ;;  %s2005_s9 = inlined_call_operand.hbm [shape: f32[2,32,256], index: 9, kind: output, shape index: {}]  }
   0x1   :  { %16 = vsyncpa [#allocation3 + $0x1], 0 }
   0x2   :  { %17 = vsyncpa [#allocation4], 0 }
   0x3   :  { %19 = vsyncpa [#allocation4 + $0x1], 0  ;;  %s1356_s30 = smov 0   ;;  %s1358_s10 = smov 0  }
   0x4   :  { %s1360_s11 = smov 0   ;;  %s1362_s12 = smov 0  }
   0x5 LB: > { %2009 = sst [smem:[#allocation8_spill]] %s1284_s11  ;;  %s1377_s13 = sadd.s32 4294967295, %s1288_s12   ;;  %s1288_s12 = sphi %s1362_s12, %s2018_s12   ;;  %s1284_s11 = sphi %s1360_s11, %s2020_s11   ;;  %s1280_s10 = sphi %s1358_s10, %s2022_s10   ;;  %s1276_s30 = sphi %s1356_s30, %s2021_s30  }
   0x6   : > { %s1068_s14 = sadd.s32 4294967294, %s1288_s12   ;;  %s1381_s15 = sadd.s32 1, %s1288_s12  }
   0x7   : > { %2010 = sst [smem:[#allocation9_spill]] %s1381_s15  ;;  %s32_s16 = sadd.s32 1, %s1284_s11 }
   0x8   : > { %s29_s17 = ssub.s32 %s1288_s12, %s1381_s15  ;;  %p39_p0 = scmp.ne.s32.totalorder %s1284_s11, %s1280_s10 }
   0x9   : > { %p30_p1 = scmp.eq.s32.totalorder %s29_s17, 0  ;;  %p40_p2 = scmp.eq.s32.totalorder %s1288_s12, 0 }
   0xa   : > { %p45_p3 = scmp.ne.s32.totalorder %s1280_s10, %s1276_s30  ;;  %p46_p4 = scmp.eq.s32.totalorder %s1377_s13, 0 }
   0xb   : > { %s1393_s18 = scalar_select %p30_p1, %s1284_s11, %s32_s16  }
   0xc   : > { %p1395_p5 = por %p40_p2, %p39_p0  ;;  %p1399_p6 = por %p46_p4, %p45_p3 }
   0xd   : > { %2011 = sst [smem:[#allocation10_spill]] %s1393_s18  ;;  %p237_p7 = scmp.eq.s32.totalorder %s1377_s13, 1 }
   0xe   : > { %p243_p8 = scmp.eq.s32.totalorder %s1068_s14, 1  ;;  %p1098_p10 = scmp.lt.s32.totalorder %s1288_s12, 2 }
   0xf   : > { %p1406_p11 = por %p237_p7, %p39_p0  ;;  %s287_s23 = sand.u32 1, %s1284_s11  }
  0x10   : > { %p1410_p12 = por %p243_p8, %p45_p3  ;;  %s1084_s24 = sshll.u32 %s1288_s12, 6 }
  0x11   : > { %s1071_s25 = sshll.u32 %s287_s23, 6  ;;  %s296_s28 = scalar_lea.hbm %s1996_s0, %s1084_s24 }
  0x12   : > { %s297_s29 = sshll.u32 %s296_s28, 4  ;;  %s291_s14 = scalar_lea.vmem [#allocation2], %s1071_s25  ;;  %s298_s29 = int_to_ptr.hbm [resolvable:$true] %s297_s29 }
  0x13   : > { %s299_s16 = sshll.u32 %s291_s14, 4  ;;  %p1421_p13 = pnand %p1098_p10, %p1395_p5  ;;  %s300_s16 = int_to_ptr.vmem [resolvable:$true] %s299_s16 }
  0x14   : > { %p1074_p0 = scmp.ge.s32.totalorder %s1288_s12, 1  ;;  %p307_p1 = scmp.lt.s32.totalorder %s1288_s12, 3 }
  0x15   : > { %s288_s18 = scalar_lea.sflag [#allocation3], %s287_s23  ;;  %s1192_s11 = sshra.s32 %s298_s29, 4  ;;  %s1193_s11 = int_to_ptr.hbm [resolvable:$true] %s1192_s11 }
  0x16   : > { %s1194_s15 = scalar_lea.hbm %s1193_s11, 64  ;;  %p1196_p3 = pneg %p1421_p13 }
  0x17   : > { %p1195_p2 = scmp.ne.s32.totalorder %s1193_s11, %s1194_s15  ;;  %s1199_s19 = scalar_lea.hbm %s1996_s0, 128 }
  0x18   : > { %p1200_p5 = scmp.lt.s32.totalorder %s1193_s11, %s1996_s0  ;;  %p1201_p8 = scmp.lt.s32.totalorder %s1199_s19, %s1194_s15 }
  0x19   : > { %p1197_p4 = pnand %p1196_p3, %p1195_p2 }
  0x1a   : > { %p1202_p10 = por %p1201_p8, %p1200_p5 }
  0x1b   : > { %p1198_p7 = pneg %p1197_p4 }
  0x1d   : > { %p1203_p9 = pnand %p1202_p10, %p1198_p7 }
  0x1f   : > { %1206 = shalt.err (!%p1203_p9)
}
  0x20   : > { %s1290_s23 = smov 256   ;;  %s1291_s28 = smov 16  }
  0x21   : > { %1093 = dma.hbm_to_vmem [thread:$0]  (!%p1421_p13), %s298_s29, 1024, %s300_s16, %s288_s18, %s1290_s23, %s1290_s23, %s1291_s28  }
  0x22   : > { %p308_p2 = pnand %p1074_p0, %p307_p1 }
  0x23   : > { %s1442_s14 = sand.u32 (!%p308_p2), 1, %s1280_s10  }
  0x24   : > { %311 = sbr.rel (%p308_p2) target bundleno = 705 (0x2c1), region = 56  ;;  %s1075_s11 = sshll.u32 (!%p308_p2), %s1442_s14, 6 }
  0x25   : > { %s314_s15 = scalar_lea.sflag (!%p308_p2), [#allocation3], %s1442_s14  ;;  %s317_s24 = scalar_lea.vmem (!%p308_p2), [#allocation2], %s1075_s11 }
  0x29   : > { %1267 = dma.done.wait (%p1399_p6), %s314_s15, 1024  }
  0x2a   : > { %1269 = vsyncadd (%p1399_p6), %s314_s15, 4294966272  ;;  %v1452_v0 = vld [vmem:[%s317_s24 + $0x20] sm:$0xff]  ;;  %v1454_v1 = vld [vmem:[%s317_s24 + $0x8] sm:$0xff]  ;;  %s1292_s18 = smov 1   ;;  %v1293_v3 = vmov 0   ;;  %s1294_s20 = smov 127   ;;  %v377_v38 = vlaneseq }
  0x2b   : > { %v1456_v2 = vld [vmem:[%s317_s24] sm:$0xff]  ;;  %365 = vrot.lane.b32.xlu1 %v1452_v0, %s1292_s18  ;;  %369 = vrot.lane.b32.xlu2 %v1454_v1, %s1292_s18  ;;  %v1464_v4 = vld [vmem:[%s317_s24 + $0x30] sm:$0xff]  ;;  %v1295_v13 = vmov 1   ;;  %v1296_v14 = vmov 2   ;;  %v1297_v15 = vmov 3   ;;  %v1298_v16 = vmov 4  }
  0x2c   : > { %361 = vrot.lane.b32.xlu0 %v1456_v2, %s1292_s18  ;;  %1149 = vset.pattern.permute.xlu2 %v1293_v3  ;;  %v1466_v5 = vld [vmem:[%s317_s24 + $0x18] sm:$0xff]  ;;  %v1468_v6 = vld [vmem:[%s317_s24 + $0x10] sm:$0xff]  ;;  %v1475_v8 = vld [vmem:[%s317_s24 + $0x28] sm:$0xff]  ;;  %v1299_v17 = vmov 5   ;;  %v1556_v40 = vand.u32 127, %v377_v38  ;;  %v1300_v51 = vmov 6  }
  0x2d   : > { %1148 = vset.pattern.permute.xlu1 %v1293_v3  ;;  %1150 = vset.pattern.permute.xlu0 %v1293_v3  ;;  %v1473_v7 = vld [vmem:[%s317_s24 + $0x38] sm:$0xff]  ;;  %v1489_v9 = vld [vmem:[%s1997_s1] sm:$0xff]  ;;  %v1494_v10 = vld [vmem:[%s1997_s1 + $0x8] sm:$0xff]  ;;  %vm874_vm3 = vcmask 15360   ;;  %s1304_s28 = smov 112   ;;  %s1941_s25 = scalar_lea.vmem [#allocation5], %s1075_s11 }
  0x2e   : > { %v1502_v11 = vld [vmem:[%s1997_s1 + $0x18] sm:$0xff]  ;;  %v1507_v12 = vld [vmem:[%s1997_s1 + $0x10] sm:$0xff]  ;;  %v388_v42 = vld [vmem:[%s2003_s7] ss:$4 sm:$0x3]  ;;  %vm379_vm0 = vcmp.lt.s32.totalorder %v1556_v40, 1 }
  0x2f   : > { %v1077_v45 = vld [vmem:[%s2003_s7 + $0x2] ss:$4 sm:$0x3]  ;;  %v390_v46 = vperm.slane %v388_v42, 0  ;;  %vm418_vm1 = vcmp.lt.s32.totalorder %v1556_v40, 127  ;;  %v391_v53 = vperm.slane %v388_v42, 1 }
  0x30   : > { %v430_v50 = vperm.slane %v1077_v45, 0  ;;  %vm554_vm2 = vcmp.lt.s32.totalorder %v1556_v40, 16  ;;  %vm777_vm4 = vcmp.lt.s32.totalorder %v1556_v40, 112  ;;  %s1085_s11 = sshll.u32 %s1377_s13, 6  ;;  %s992_s23 = sshll.u32 %s1941_s25, 4  ;;  %s993_s23 = int_to_ptr.vmem [resolvable:$true] %s992_s23 }
  0x31   : > { %s991_s27 = scalar_lea.hbm %s2005_s9, %s1085_s11  ;;  %s980_s15 = scalar_lea.sflag [#allocation4], %s1442_s14 }
  0x32   : > { %s994_s13 = sshll.u32 %s991_s27, 4  ;;  %s1242_s16 = scalar_lea.hbm %s2005_s9, 128  ;;  %s995_s13 = int_to_ptr.hbm [resolvable:$true] %s994_s13 }
  0x33   : > { %367 = vrot.lane.b32.xlu1 %v1464_v4, %s1292_s18  ;;  %371 = vrot.lane.b32.xlu2 %v1466_v5, %s1292_s18  ;;  %s1236_s24 = sshra.s32 %s995_s13, 4  ;;  %s1237_s24 = int_to_ptr.hbm [resolvable:$true] %s1236_s24 }
  0x34   : > { %363 = vrot.lane.b32.xlu0 %v1468_v6, %s1292_s18  ;;  %p1243_p0 = scmp.lt.s32.totalorder %s1237_s24, %s2005_s9 }
  0x3b   : > { %375 = vrot.lane.b32.xlu1 %v1473_v7, %s1292_s18  ;;  %402 = vrot.lane.b32.xlu2 %v1456_v2, %s1294_s20 }
  0x3c   : > { %373 = vrot.lane.b32.xlu0 %v1475_v8, %s1292_s18 }
  0x43   : > { %406 = vrot.lane.b32.xlu1 %v1452_v0, %s1294_s20  ;;  %408 = vrot.lane.b32.xlu2 %v1464_v4, %s1294_s20 }
  0x44   : > { %404 = vrot.lane.b32.xlu0 %v1468_v6, %s1294_s20 }
  0x4b   : > { %412 = vrot.lane.b32.xlu1 %v1466_v5, %s1294_s20  ;;  %414 = vrot.lane.b32.xlu2 %v1475_v8, %s1294_s20 }
  0x4c   : > { %410 = vrot.lane.b32.xlu0 %v1454_v1, %s1294_s20 }
  0x53   : > { %448 = vperm.xlu1 %1148, %v1489_v9   ;;  %453 = vperm.xlu2 %1149, %v1494_v10  }
  0x54   : > { %416 = vrot.lane.b32.xlu0 %v1473_v7, %s1294_s20  ;;  %s1301_s20 = smov 16  }
  0x5b   : > { %463 = vperm.xlu1 %1148, %v1502_v11   ;;  %1151 = vset.pattern.permute.xlu2 %v1295_v13 }
  0x5c   : > { %458 = vperm.xlu0 %1150, %v1507_v12   ;;  %475 = vperm.xlu2 %1151, %v1489_v9  }
  0x63   : > { %1152 = vset.pattern.permute.xlu1 %v1295_v13 }
  0x64   : > { %1153 = vset.pattern.permute.xlu0 %v1295_v13  ;;  %479 = vperm.xlu1 %1152, %v1494_v10  }
  0x65   : > { %483 = vperm.xlu2 %1151, %v1507_v12   ;;  %487 = vperm.xlu0 %1153, %v1502_v11  }
  0x6c   : > { %1154 = vset.pattern.permute.xlu1 %v1296_v14 }
  0x6d   : > { %1155 = vset.pattern.permute.xlu2 %v1296_v14  ;;  %1157 = vset.pattern.permute.xlu0 %v1297_v15  ;;  %v1602_v14 = vperm.slane %v1077_v45, 1 }
  0x6e   : > { %507 = vperm.xlu1 %1154, %v1489_v9   ;;  %511 = vperm.xlu2 %1155, %v1494_v10  }
  0x6f   : > { %582 = vperm.xlu0 %1157, %v1494_v10  }
  0x76   : > { %515 = vperm.xlu1 %1154, %v1507_v12   ;;  %519 = vperm.xlu2 %1155, %v1502_v11  }
  0x77   : > { %1161 = vset.pattern.permute.xlu0 %v1298_v16 }
  0x78   : > { %610 = vperm.xlu0 %1161, %v1507_v12  }
  0x7e   : > { %1158 = vset.pattern.permute.xlu1 %v1297_v15  ;;  %1156 = vset.pattern.permute.xlu2 %v1297_v15 }
  0x7f   : > { %586 = vperm.xlu1 %1158, %v1507_v12   ;;  %578 = vperm.xlu2 %1156, %v1489_v9  }
  0x80   : > { %1164 = vset.pattern.permute.xlu0 %v1299_v17 }
  0x85   : > { %v370_v18 = vpop.permute.xlu2 %369 }
  0x87   : > { %1159 = vset.pattern.permute.xlu1 %v1298_v16  ;;  %590 = vperm.xlu2 %1156, %v1502_v11  }
  0x88   : > { %602 = vperm.xlu1 %1159, %v1489_v9  }
  0x8d   : > { %v1525_v19 = vpop.permute.xlu2 %371 }
  0x8f   : > { %1160 = vset.pattern.permute.xlu2 %v1298_v16 }
  0x90   : > { %614 = vperm.xlu1 %1159, %v1502_v11   ;;  %606 = vperm.xlu2 %1160, %v1494_v10  }
  0x95   : > { %v403_v20 = vpop.permute.xlu2 %402 }
  0x98   : > { %1163 = vset.pattern.permute.xlu1 %v1299_v17  ;;  %1162 = vset.pattern.permute.xlu2 %v1299_v17 }
  0x99   : > { %638 = vperm.xlu1 %1163, %v1494_v10   ;;  %634 = vperm.xlu2 %1162, %v1489_v9  }
  0x9d   : > { %v1531_v21 = vpop.permute.xlu1 %365  ;;  %v1533_v22 = vpop.permute.xlu2 %408 }
  0x9e   : > { %v362_v23 = vpop.permute.xlu0 %361 }
  0x9f   : > { %v380_v57 = vsel %vm379_vm0, %v362_v23, %v370_v18  ;;  %v384_v58 = vsel %vm379_vm0, %v370_v18, %v362_v23 }
  0xa0   : > { %v1598_v62 = vmul.f32 %v390_v46, %v384_v58  ;;  %v1600_v63 = vmul.f32 %v391_v53, %v380_v57 }
  0xa1   : > { %642 = vperm.xlu2 %1162, %v1507_v12   ;;  %1165 = vset.pattern.permute.xlu1 %v1300_v51 }
  0xa5   : > { %v368_v24 = vpop.permute.xlu1 %367  ;;  %v1536_v25 = vpop.permute.xlu2 %414 }
  0xa6   : > { %v1538_v26 = vpop.permute.xlu0 %363 }
  0xa7   : > { %v385_v44 = vsel %vm379_vm0, %v1525_v19, %v1538_v26 }
  0xa8   : > { %v1580_v49 = vmul.f32 %v390_v46, %v385_v44 }
  0xa9   : > { %1166 = vset.pattern.permute.xlu2 %v1300_v51 }
  0xad   : > { %v376_v27 = vpop.permute.xlu1 %375  ;;  %v1540_v28 = vpop.permute.xlu2 %453 }
  0xae   : > { %v1542_v29 = vpop.permute.xlu0 %373  ;;  %v468_v54 = vmul.f32 %v1540_v28, %v1580_v49  ;;  %v387_v44 = vsel %vm379_vm0, %v376_v27, %v368_v24 }
  0xaf   : > { %v1630_v58 = vmul.f32 %v390_v46, %v387_v44 }
  0xb5   : > { %v1544_v30 = vpop.permute.xlu1 %406 }
  0xb6   : > { %v1546_v31 = vpop.permute.xlu0 %404  ;;  %v476_v32 = vpop.permute.xlu2 %475 }
  0xb7   : > { %v490_v17 = vmul.f32 %v476_v32, %v1456_v2  ;;  %v491_v18 = vmul.f32 %v476_v32, %v1454_v1  ;;  %v386_v32 = vsel %vm379_vm0, %v1542_v29, %v1531_v21 }
  0xbd   : > { %v1548_v33 = vpop.permute.xlu1 %412 }
  0xbe   : > { %v411_v34 = vpop.permute.xlu0 %410  ;;  %v420_v48 = vsel %vm418_vm1, %v1546_v31, %v1548_v33 }
  0xbf   : > { %v1550_v35 = vpop.permute.xlu2 %483  ;;  %v1586_v55 = vmul.f32 %v430_v50, %v420_v48  ;;  %v419_v15 = vsel %vm418_vm1, %v403_v20, %v411_v34  ;;  %v423_v16 = vsel %vm418_vm1, %v411_v34, %v403_v20  ;;  %v383_v20 = vsel %vm379_vm0, %v368_v24, %v376_v27 }
  0xc0   : > { %v1615_v45 = vmul.f32 %v430_v50, %v419_v15  ;;  %v1618_v48 = vmul.f32 %v1602_v14, %v423_v16  ;;  %v1639_v15 = vmul.f32 %v391_v53, %v383_v20  ;;  %v421_v16 = vsel %vm418_vm1, %v1544_v30, %v1536_v25 }
  0xc1   : > { %v1668_v20 = vmul.f32 %v430_v50, %v421_v16 }
  0xc5   : > { %v449_v36 = vpop.permute.xlu1 %448 }
  0xc6   : > { %v1554_v39 = vpop.permute.xlu0 %416  ;;  %v466_v23 = vmul.f32 %v449_v36, %v1598_v62  ;;  %v467_v38 = vmul.f32 %v449_v36, %v1600_v63 }
  0xc7   : > { %v422_v24 = vsel %vm418_vm1, %v1533_v22, %v1554_v39 }
  0xc8   : > { %v1552_v37 = vpop.permute.xlu2 %511  ;;  %v498_v36 = vadd.f32 %v490_v17, %v466_v23  ;;  %v499_v51 = vadd.f32 %v491_v18, %v467_v38  ;;  %v381_v18 = vsel %vm379_vm0, %v1538_v26, %v1525_v19  ;;  %v426_v23 = vsel %vm418_vm1, %v1554_v39, %v1533_v22 }
  0xc9   : > { %v524_v59 = vmul.f32 %v1552_v37, %v1586_v55  ;;  %v1664_v44 = vmul.f32 %v430_v50, %v422_v24  ;;  %v494_v22 = vmul.f32 %v1550_v35, %v1452_v0 }
  0xcd   : > { %v1558_v41 = vpop.permute.xlu1 %463 }
  0xce   : > { %v1574_v47 = vpop.permute.xlu0 %458  ;;  %v472_v17 = vmul.f32 %v1558_v41, %v1630_v58  ;;  %v473_v19 = vmul.f32 %v1558_v41, %v1639_v15  ;;  %v425_v41 = vsel %vm418_vm1, %v1536_v25, %v1544_v30 }
  0xd0   : > { %v1563_v43 = vpop.permute.xlu2 %519 }
  0xd6   : > { %v1582_v52 = vpop.permute.xlu1 %479 }
  0xd7   : > { %v492_v56 = vmul.f32 %v1582_v52, %v1468_v6  ;;  %v488_v42 = vpop.permute.xlu0 %487 }
  0xd9   : > { %v500_v60 = vadd.f32 %v492_v56, %v468_v54  ;;  %v1596_v61 = vpop.permute.xlu2 %578 }
  0xdb   : > { %v532_v13 = vadd.f32 %v524_v59, %v500_v60  ;;  %v496_v59 = vmul.f32 %v488_v42, %v1464_v4  ;;  %v1633_v60 = vmul.f32 %v390_v46, %v386_v32  ;;  %v497_v46 = vmul.f32 %v488_v42, %v1473_v7 }
  0xdc   : > { %v382_v42 = vsel %vm379_vm0, %v1531_v21, %v1542_v29  ;;  %v1672_v32 = vmul.f32 %v391_v53, %v381_v18  ;;  %v528_v21 = vmul.f32 %v1563_v43, %v1664_v44 }
  0xdd   : > { %540 = vrot.lane.b32.xlu1 %v532_v13, %s1301_s20  ;;  %v470_v38 = vmul.f32 %v1574_v47, %v1633_v60  ;;  %v504_v26 = vadd.f32 %v496_v59, %v472_v17  ;;  %v505_v29 = vadd.f32 %v497_v46, %v473_v19  ;;  %v493_v59 = vmul.f32 %v1582_v52, %v1466_v5 }
  0xde   : > { %v469_v30 = vmul.f32 %v1540_v28, %v1672_v32  ;;  %v1697_v46 = vmul.f32 %v1602_v14, %v425_v41 }
  0xdf   : > { %v502_v50 = vadd.f32 %v494_v22, %v470_v38 }
  0xe0   : > { %v508_v34 = vpop.permute.xlu1 %507 }
  0xe1   : > { %v522_v54 = vmul.f32 %v508_v34, %v1615_v45  ;;  %v523_v56 = vmul.f32 %v508_v34, %v1618_v48  ;;  %v1628_v57 = vpop.permute.xlu2 %590  ;;  %v583_v39 = vpop.permute.xlu0 %582  ;;  %v1675_v34 = vmul.f32 %v1602_v14, %v426_v23 }
  0xe2   : > { %v595_v24 = vmul.f32 %v583_v39, %v1580_v49 }
  0xe3   : > { %v530_v27 = vadd.f32 %v522_v54, %v498_v36  ;;  %v531_v13 = vadd.f32 %v523_v56, %v499_v51  ;;  %v1679_v51 = vmul.f32 %v391_v53, %v382_v42  ;;  %v529_v56 = vmul.f32 %v1563_v43, %v1675_v34 }
  0xe4   : > { %v596_v53 = vmul.f32 %v583_v39, %v1672_v32  ;;  %v424_v43 = vsel %vm418_vm1, %v1548_v33, %v1546_v31  ;;  %v495_v31 = vmul.f32 %v1550_v35, %v1475_v8  ;;  %v501_v33 = vadd.f32 %v493_v59, %v469_v30 }
  0xe5   : > { %538 = vrot.lane.b32.xlu0 %v530_v27, %s1301_s20  ;;  %546 = vrot.lane.b32.xlu1 %v531_v13, %s1301_s20  ;;  %v536_v13 = vadd.f32 %v528_v21, %v504_v26  ;;  %v537_v52 = vadd.f32 %v529_v56, %v505_v29  ;;  %v471_v18 = vmul.f32 %v1574_v47, %v1679_v51  ;;  %v1302_v30 = vmov 7  }
  0xe6   : > { %v1713_v28 = vmul.f32 %v1602_v14, %v424_v43  ;;  %v593_v35 = vmul.f32 %v1596_v61, %v1598_v62  ;;  %v594_v29 = vmul.f32 %v1596_v61, %v1600_v63  ;;  %v599_v61 = vmul.f32 %v1628_v57, %v1630_v58 }
  0xe7   : > { %v503_v19 = vadd.f32 %v495_v31, %v471_v18  ;;  %v841_v43 = vadd.f32 %v1454_v1, %v1456_v2  ;;  %v847_v18 = vadd.f32 %v1475_v8, %v1452_v0 }
  0xe8   : > { %v516_v36 = vpop.permute.xlu1 %515  ;;  %v525_v47 = vmul.f32 %v1552_v37, %v1713_v28 }
  0xe9   : > { %v526_v54 = vmul.f32 %v516_v36, %v1668_v20  ;;  %v527_v42 = vmul.f32 %v516_v36, %v1697_v46 }
  0xea   : > { %v607_v27 = vpop.permute.xlu2 %606  ;;  %v533_v39 = vadd.f32 %v525_v47, %v501_v33  ;;  %v1303_v33 = vmov 8  }
  0xeb   : > { %v534_v16 = vadd.f32 %v526_v54, %v502_v50  ;;  %v619_v17 = vmul.f32 %v607_v27, %v1468_v6  ;;  %v620_v25 = vmul.f32 %v607_v27, %v1466_v5  ;;  %v535_v22 = vadd.f32 %v527_v42, %v503_v19  ;;  %v563_v19 = vld [vmem:[%s2004_s8] ss:$4 sm:$0x3] }
  0xed   : > { %v1705_v23 = vadd.f32 %v619_v17, %v595_v24  ;;  %v1707_v38 = vadd.f32 %v620_v25, %v596_v53  ;;  %542 = vrot.lane.b32.xlu2 %v534_v16, %s1301_s20  ;;  %544 = vrot.lane.b32.xlu0 %v536_v13, %s1301_s20  ;;  %v600_v13 = vmul.f32 %v1628_v57, %v1639_v15 }
  0xee   : > { %552 = vrot.lane.b32.xlu1 %v537_v52, %s1301_s20  ;;  %v850_v52 = vadd.f32 %v1473_v7, %v1464_v4  ;;  %v844_v57 = vadd.f32 %v1466_v5, %v1468_v6 }
  0xf1   : > { %v1720_v26 = vpop.permute.xlu1 %586 }
  0xf3   : > { %v635_v14 = vpop.permute.xlu2 %634 }
  0xf4   : > { %v649_v41 = vmul.f32 %v635_v14, %v1615_v45  ;;  %v650_v50 = vmul.f32 %v635_v14, %v1618_v48  ;;  %v565_v14 = vperm.slane %v563_v19, 0 }
  0xf5   : > { %548 = vrot.lane.b32.xlu2 %v533_v39, %s1301_s20  ;;  %550 = vrot.lane.b32.xlu0 %v535_v22, %s1301_s20 }
  0xf6   : > { %674 = vperm.xlu1 %1165, %v1489_v9  }
  0xfa   : > { %v603_v21 = vpop.permute.xlu1 %602 }
  0xfb   : > { %v617_v37 = vmul.f32 %v603_v21, %v1456_v2  ;;  %v618_v36 = vmul.f32 %v603_v21, %v1454_v1  ;;  %v643_v31 = vpop.permute.xlu2 %642  ;;  %v566_v21 = vperm.slane %v563_v19, 1 }
  0xfc   : > { %v653_v19 = vmul.f32 %v643_v31, %v1668_v20 }
  0xfd   : > { %v625_v54 = vadd.f32 %v617_v37, %v593_v35  ;;  %v626_v56 = vadd.f32 %v618_v36, %v594_v29  ;;  %646 = vperm.xlu0 %1164, %v1502_v11   ;;  %v611_v35 = vpop.permute.xlu0 %610 }
  0xfe   : > { %682 = vperm.xlu1 %1165, %v1507_v12  }
  0xff   : > { %v657_v59 = vadd.f32 %v649_v41, %v625_v54  ;;  %v658_v24 = vadd.f32 %v650_v50, %v626_v56 }
 0x102   : > { %v615_v27 = vpop.permute.xlu1 %614 }
 0x103   : > { %v623_v53 = vmul.f32 %v615_v27, %v1464_v4  ;;  %v624_v16 = vmul.f32 %v615_v27, %v1473_v7 }
 0x105   : > { %v1741_v17 = vadd.f32 %v623_v53, %v599_v61  ;;  %v1743_v25 = vadd.f32 %v624_v16, %v600_v13  ;;  %1167 = vset.pattern.permute.xlu0 %v1302_v30 }
 0x106   : > { %1168 = vset.pattern.permute.xlu1 %v1302_v30 }
 0x10b   : > { %v639_v42 = vpop.permute.xlu1 %638 }
 0x10c   : > { %v651_v22 = vmul.f32 %v639_v42, %v1586_v55  ;;  %v652_v39 = vmul.f32 %v639_v42, %v1713_v28  ;;  %v598_v42 = vmul.f32 %v1720_v26, %v1679_v51 }
 0x10e   : > { %v659_v41 = vadd.f32 %v651_v22, %v1705_v23  ;;  %v660_v50 = vadd.f32 %v652_v39, %v1707_v38 }
 0x11e   : > { %842 = vadd.xlane.f32.xlu2 %v841_v43 }
 0x126   : > { %851 = vadd.xlane.f32.xlu2 %v850_v52 }
 0x127   : > { %845 = vadd.xlane.f32.xlu0 %v844_v57 }
 0x128   : > { %848 = vadd.xlane.f32.xlu1 %v847_v18 }
 0x13b   : > { %698 = vperm.xlu0 %1167, %v1489_v9  }
 0x13e   : > { %678 = vperm.xlu2 %1166, %v1494_v10  }
 0x141   : > { %702 = vperm.xlu1 %1168, %v1494_v10  }
 0x143   : > { %1172 = vset.pattern.permute.xlu0 %v1303_v33 }
 0x144   : > { %742 = vperm.xlu0 %1172, %v1502_v11  }
 0x146   : > { %686 = vperm.xlu2 %1166, %v1502_v11  }
 0x147   : > { %v543_v47 = vpop.permute.xlu2 %542 }
 0x149   : > { %710 = vperm.xlu1 %1168, %v1502_v11  }
 0x14c   : > { %1173 = vset.pattern.permute.xlu0 %v1293_v3 }
 0x14e   : > { %1169 = vset.pattern.permute.xlu2 %v1302_v30 }
 0x14f   : > { %v549_v29 = vpop.permute.xlu2 %548  ;;  %v541_v37 = vpop.permute.xlu1 %540  ;;  %706 = vperm.xlu2 %1169, %v1507_v12  }
 0x150   : > { %v556_v11 = vsel %vm554_vm2, %v541_v37, %v549_v29  ;;  %v560_v36 = vsel %vm554_vm2, %v549_v29, %v541_v37 }
 0x151   : > { %v571_v54 = vmul.f32 %v565_v14, %v560_v36  ;;  %v572_v56 = vmul.f32 %v566_v21, %v556_v11  ;;  %1171 = vset.pattern.permute.xlu1 %v1303_v33 }
 0x152   : > { %734 = vperm.xlu1 %1171, %v1494_v10  }
 0x153   : > { %v1774_v27 = vadd.f32 %v659_v41, %v571_v54  ;;  %v1776_v61 = vadd.f32 %v660_v50, %v572_v56 }
 0x157   : > { %v539_v13 = vpop.permute.xlu0 %538  ;;  %v547_v53 = vpop.permute.xlu1 %546  ;;  %1170 = vset.pattern.permute.xlu2 %v1303_v33 }
 0x158   : > { %v555_v16 = vsel %vm554_vm2, %v539_v13, %v547_v53  ;;  %v559_v23 = vsel %vm554_vm2, %v547_v53, %v539_v13  ;;  %730 = vperm.xlu2 %1170, %v1489_v9   ;;  %v597_v9 = vmul.f32 %v1720_v26, %v1633_v60 }
 0x159   : > { %v569_v38 = vmul.f32 %v565_v14, %v559_v23  ;;  %v570_v30 = vmul.f32 %v566_v21, %v555_v16 }
 0x15a   : > { %1175 = vset.pattern.permute.xlu1 %v1293_v3 }
 0x15b   : > { %v1784_v10 = vadd.f32 %v657_v59, %v569_v38  ;;  %v1786_v43 = vadd.f32 %v658_v24, %v570_v30  ;;  %v621_v59 = vmul.f32 %v611_v35, %v1452_v0  ;;  %v622_v24 = vmul.f32 %v611_v35, %v1475_v8 }
 0x15d   : > { %v629_v22 = vadd.f32 %v621_v59, %v597_v9  ;;  %v630_v39 = vadd.f32 %v622_v24, %v598_v42  ;;  %v857_v42 = vld [vmem:[%s1999_s3] sm:$0xff]  ;;  %v859_v24 = vld [vmem:[%s1999_s3 + $0x10] sm:$0xff] }
 0x15f   : > { %v545_v52 = vpop.permute.xlu0 %544  ;;  %v661_v26 = vadd.f32 %v653_v19, %v629_v22 }
 0x160   : > { %v553_v57 = vpop.permute.xlu1 %552  ;;  %738 = vperm.xlu2 %1170, %v1507_v12   ;;  %v654_v12 = vmul.f32 %v643_v31, %v1697_v46 }
 0x161   : > { %v558_v18 = vsel %vm554_vm2, %v545_v52, %v553_v57  ;;  %v562_v33 = vsel %vm554_vm2, %v553_v57, %v545_v52 }
 0x162   : > { %v662_v36 = vadd.f32 %v654_v12, %v630_v39  ;;  %v575_v53 = vmul.f32 %v565_v14, %v562_v33  ;;  %v576_v16 = vmul.f32 %v566_v21, %v558_v18 }
 0x167   : > { %v551_v29 = vpop.permute.xlu0 %550 }
 0x168   : > { %v557_v37 = vsel %vm554_vm2, %v543_v47, %v551_v29  ;;  %v561_v11 = vsel %vm554_vm2, %v551_v29, %v543_v47  ;;  %1174 = vset.pattern.permute.xlu2 %v1293_v3  ;;  %v1818_v30 = vpop.permute.xlu1 %674 }
 0x169   : > { %v573_v41 = vmul.f32 %v565_v14, %v561_v11  ;;  %v574_v50 = vmul.f32 %v566_v21, %v557_v37  ;;  %v858_v21 = vld [vmem:[%s1999_s3 + $0x8] sm:$0xff] }
 0x16b   : > { %v1806_v35 = vadd.f32 %v661_v26, %v573_v41  ;;  %v1808_v54 = vadd.f32 %v662_v36, %v574_v50 }
 0x16f   : > { %v647_v31 = vpop.permute.xlu0 %646 }
 0x170   : > { %v655_v56 = vmul.f32 %v647_v31, %v1664_v44  ;;  %v656_v13 = vmul.f32 %v647_v31, %v1675_v34  ;;  %v1820_v57 = vpop.permute.xlu1 %682 }
 0x172   : > { %v663_v23 = vadd.f32 %v655_v56, %v1741_v17  ;;  %v664_v47 = vadd.f32 %v656_v13, %v1743_v25  ;;  %v860_v17 = vld [vmem:[%s1999_s3 + $0x18] sm:$0xff] }
 0x174   : > { %v1814_v3 = vadd.f32 %v663_v23, %v575_v53  ;;  %v1816_v38 = vadd.f32 %v664_v47, %v576_v16 }
 0x191   : > { %v843_v52 = vpop.xlane.xlu2 %842 }
 0x192   : > { %v853_v9 = vmul.f32 0.00390625, %v843_v52 }
 0x194   : > { %v870_v33 = vmul.f32 %v857_v42, %v853_v9  ;;  %v861_v9 = vld [vmem:[%s2000_s4] sm:$0x1] }
 0x196   : > { %v875_v37 = vsel %vm874_vm3, %v870_v33, 0.0  ;;  %v862_v33 = vld [vmem:[%s2001_s5] sm:$0xff] }
 0x199   : > { %v852_v14 = vpop.xlane.xlu2 %851 }
 0x19a   : > { %v856_v25 = vmul.f32 0.00390625, %v852_v14  ;;  %v846_v18 = vpop.xlane.xlu0 %845 }
 0x19b   : > { %v854_v59 = vmul.f32 0.00390625, %v846_v18  ;;  %v849_v19 = vpop.xlane.xlu1 %848  ;;  %v863_v18 = vld [vmem:[%s2001_s5 + $0x8] sm:$0xff] }
 0x19c   : > { %v855_v12 = vmul.f32 0.00390625, %v849_v19  ;;  %v873_v22 = vmul.f32 %v860_v17, %v856_v25 }
 0x19d   : > { %v871_v39 = vmul.f32 %v858_v21, %v854_v59  ;;  %v864_v21 = vld [vmem:[%s2001_s5 + $0x10] sm:$0xff] }
 0x19e   : > { %v872_v29 = vmul.f32 %v859_v24, %v855_v12  ;;  %v880_v41 = vsel %vm874_vm3, %v873_v22, 0.0 }
 0x19f   : > { %v876_v11 = vsel %vm874_vm3, %v871_v39, 0.0 }
 0x1a0   : > { %v877_v26 = vadd.f32 %v876_v11, %v875_v37  ;;  %v878_v36 = vsel %vm874_vm3, %v872_v29, 0.0 }
 0x1a1   : > { %v679_v50 = vpop.permute.xlu2 %678 }
 0x1a2   : > { %v879_v31 = vadd.f32 %v878_v36, %v877_v26  ;;  %v865_v26 = vld [vmem:[%s2001_s5 + $0x18] sm:$0xff] }
 0x1a4   : > { %v881_v56 = vadd.f32 %v880_v41, %v879_v31 }
 0x1a6   : > { %v882_v13 = vrot.slane %v881_v56, 4 }
 0x1a8   : > { %v883_v53 = vadd.f32 %v882_v13, %v881_v56 }
 0x1a9   : > { %v1838_v16 = vpop.permute.xlu2 %686 }
 0x1aa   : > { %v884_v23 = vrot.slane %v883_v53, 2 }
 0x1ac   : > { %v885_v47 = vadd.f32 %v884_v23, %v883_v53  ;;  %v693_v53 = vmul.f32 %v1820_v57, %v1633_v60  ;;  %v692_v60 = vmul.f32 %v679_v50, %v1672_v32 }
 0x1ad   : > { %v699_v23 = vpop.permute.xlu0 %698 }
 0x1ae   : > { %v886_v52 = vrot.slane %v885_v47, 1 }
 0x1b0   : > { %v887_v42 = vadd.f32 %v886_v52, %v885_v47 }
 0x1b1   : > { %v707_v17 = vpop.permute.xlu2 %706 }
 0x1b2   : > { %v888_v14 = vadd.f32 %v887_v42, %v861_v9  ;;  %v717_v13 = vmul.f32 %v707_v17, %v1452_v0  ;;  %v713_v9 = vmul.f32 %v699_v23, %v1456_v2 }
 0x1b3   : > { %v703_v22 = vpop.permute.xlu1 %702 }
 0x1b4   : > { %v889_v25 = vmax.f32 %v888_v14, 0.0  ;;  %v725_v52 = vadd.f32 %v717_v13, %v693_v53  ;;  %v689_v14 = vmul.f32 %v1818_v30, %v1598_v62  ;;  %v695_v62 = vmul.f32 %v1838_v16, %v1630_v58  ;;  %v869_v53 = vld [vmem:[%s2002_s6 + $0x18] sm:$0xff] }
 0x1b5   : > { %v718_v58 = vmul.f32 %v707_v17, %v1475_v8 }
 0x1b6   : > { %v890_v59 = vperm.slane %v889_v25, 0  ;;  %v721_v0 = vadd.f32 %v713_v9, %v689_v14 }
 0x1b8   : > { %v893_v24 = vmul.f32 %v890_v59, %v864_v21  ;;  %v892_v19 = vmul.f32 %v890_v59, %v863_v18  ;;  %v891_v12 = vmul.f32 %v890_v59, %v862_v33  ;;  %v894_v36 = vmul.f32 %v890_v59, %v865_v26 }
 0x1b9   : > { %v731_v11 = vpop.permute.xlu2 %730  ;;  %v716_v18 = vmul.f32 %v703_v22, %v1466_v5  ;;  %v743_v5 = vpop.permute.xlu0 %742 }
 0x1ba   : > { %v901_v39 = vsel %vm874_vm3, %v893_v24, 0.0  ;;  %v898_v29 = vsel %vm874_vm3, %v892_v19, 0.0  ;;  %v895_v37 = vsel %vm874_vm3, %v891_v12, 0.0  ;;  %v904_v41 = vsel %vm874_vm3, %v894_v36, 0.0 }
 0x1bb   : > { %902 = vadd.xlane.f32.xlu0 %v901_v39  ;;  %899 = vadd.xlane.f32.xlu2 %v898_v29  ;;  %v711_v31 = vpop.permute.xlu1 %710  ;;  %v745_v25 = vmul.f32 %v731_v11, %v1615_v45  ;;  %v724_v59 = vadd.f32 %v716_v18, %v692_v60  ;;  %v715_v45 = vmul.f32 %v703_v22, %v1468_v6  ;;  %v809_v6 = vld [vmem:[%s1998_s2] sm:$0xff] }
 0x1bc   : > { %896 = vadd.xlane.f32.xlu1 %v895_v37  ;;  %v719_v2 = vmul.f32 %v711_v31, %v1464_v4  ;;  %v691_v12 = vmul.f32 %v679_v50, %v1580_v49  ;;  %v714_v22 = vmul.f32 %v699_v23, %v1454_v1  ;;  %v694_v49 = vmul.f32 %v1820_v57, %v1679_v51  ;;  %v867_v57 = vld [vmem:[%s2002_s6 + $0x8] sm:$0xff]  ;;  %v1078_v18 = vld [vmem:[%s2004_s8 + $0x2] ss:$4 sm:$0x3] }
 0x1bd   : > { %v753_v33 = vadd.f32 %v745_v25, %v721_v0  ;;  %v746_v8 = vmul.f32 %v731_v11, %v1618_v48  ;;  %v720_v36 = vmul.f32 %v711_v31, %v1473_v7  ;;  %v696_v1 = vmul.f32 %v1838_v16, %v1639_v15  ;;  %v812_v7 = vld [vmem:[%s1998_s2 + $0x18] sm:$0xff]  ;;  %v811_v15 = vld [vmem:[%s1998_s2 + $0x10] sm:$0xff] }
 0x1be   : > { %v727_v19 = vadd.f32 %v719_v2, %v695_v62  ;;  %v723_v4 = vadd.f32 %v715_v45, %v691_v12  ;;  %v726_v50 = vadd.f32 %v718_v58, %v694_v49 }
 0x1bf   : > { %v728_v51 = vadd.f32 %v720_v36, %v696_v1 }
 0x1c1   : > { %v739_v56 = vpop.permute.xlu2 %738 }
 0x1c2   : > { %v749_v47 = vmul.f32 %v739_v56, %v1668_v20 }
 0x1c4   : > { %905 = vadd.xlane.f32.xlu1 %v904_v41  ;;  %v757_v42 = vadd.f32 %v749_v47, %v725_v52  ;;  %v735_v21 = vpop.permute.xlu1 %734 }
 0x1c5   : > { %v748_v20 = vmul.f32 %v735_v21, %v1713_v28  ;;  %v747_v32 = vmul.f32 %v735_v21, %v1586_v55  ;;  %v751_v28 = vmul.f32 %v743_v5, %v1664_v44  ;;  %v750_v55 = vmul.f32 %v739_v56, %v1697_v46 }
 0x1c6   : > { %v690_v44 = vmul.f32 %v1818_v30, %v1600_v63  ;;  %v752_v46 = vmul.f32 %v743_v5, %v1675_v34  ;;  %v810_v63 = vld [vmem:[%s1998_s2 + $0x8] sm:$0xff]  ;;  %v868_v34 = vld [vmem:[%s2002_s6 + $0x10] sm:$0xff]  ;;  %v866_v30 = vld [vmem:[%s2002_s6] sm:$0xff] }
 0x1c7   : > { %v756_v24 = vadd.f32 %v748_v20, %v724_v59  ;;  %v759_v39 = vadd.f32 %v751_v28, %v727_v19  ;;  %v755_v29 = vadd.f32 %v747_v32, %v723_v4  ;;  %v758_v37 = vadd.f32 %v750_v55, %v726_v50 }
 0x1c8   : > { %v722_v17 = vadd.f32 %v714_v22, %v690_v44  ;;  %v760_v48 = vadd.f32 %v752_v46, %v728_v51  ;;  %v789_v20 = vperm.slane %v1078_v18, 0 }
 0x1ca   : > { %v754_v26 = vadd.f32 %v746_v8, %v722_v17 }
 0x1cf   : > { %765 = vrot.lane.b32.xlu0 %v757_v42, %s1304_s28 }
 0x1d3   : > { %761 = vrot.lane.b32.xlu2 %v753_v33, %s1304_s28  ;;  %v790_v33 = vperm.slane %v1078_v18, 1 }
 0x1d7   : > { %771 = vrot.lane.b32.xlu0 %v756_v24, %s1304_s28 }
 0x1db   : > { %767 = vrot.lane.b32.xlu2 %v759_v39, %s1304_s28 }
 0x1dd   : > { %763 = vrot.lane.b32.xlu1 %v755_v29, %s1304_s28 }
 0x1df   : > { %815 = vperm.xlu0 %1173, %v809_v6  }
 0x1e3   : > { %773 = vrot.lane.b32.xlu2 %v758_v37, %s1304_s28 }
 0x1e5   : > { %769 = vrot.lane.b32.xlu1 %v754_v26, %s1304_s28 }
 0x1eb   : > { %820 = vperm.xlu2 %1174, %v810_v63  }
 0x1ed   : > { %775 = vrot.lane.b32.xlu1 %v760_v48, %s1304_s28  ;;  %s1238_s28 = scalar_lea.hbm %s1237_s24, 64 }
 0x1ee   : > { %p1239_p6 = scmp.ne.s32.totalorder %s1237_s24, %s1238_s28  ;;  %p1244_p1 = scmp.lt.s32.totalorder %s1242_s16, %s1238_s28 }
 0x1f0   : > { %p1240_p9 = pnand %p1239_p6, %p1406_p11  ;;  %p1245_p3 = por %p1244_p1, %p1243_p0 }
 0x1f2   : > { %p1241_p13 = pneg %p1240_p9 }
 0x1f3   : > { %830 = vperm.xlu2 %1174, %v812_v7  }
 0x1f4   : > { %p1246_p4 = pnand %p1245_p3, %p1241_p13 }
 0x1f5   : > { %825 = vperm.xlu1 %1175, %v811_v15  }
 0x22e   : > { %v903_v16 = vpop.xlane.xlu0 %902  ;;  %v900_v31 = vpop.xlane.xlu2 %899 }
 0x22f   : > { %v909_v11 = vadd.f32 %v903_v16, %v868_v34  ;;  %v897_v41 = vpop.xlane.xlu1 %896  ;;  %v908_v13 = vadd.f32 %v900_v31, %v867_v57 }
 0x230   : > { %v907_v56 = vadd.f32 %v897_v41, %v866_v30 }
 0x231   : > { %923 = vperm.xlu2 %1174, %v909_v11   ;;  %918 = vperm.xlu0 %1173, %v908_v13  }
 0x232   : > { %913 = vperm.xlu1 %1175, %v907_v56  }
 0x236   : > { %v762_v52 = vpop.permute.xlu2 %761 }
 0x237   : > { %v906_v23 = vpop.xlane.xlu1 %905 }
 0x238   : > { %v910_v47 = vadd.f32 %v906_v23, %v869_v53 }
 0x23a   : > { %928 = vperm.xlu1 %1175, %v910_v47  }
 0x23e   : > { %v768_v9 = vpop.permute.xlu2 %767 }
 0x241   : > { %v766_v60 = vpop.permute.xlu0 %765 }
 0x246   : > { %v774_v14 = vpop.permute.xlu2 %773 }
 0x247   : > { %v780_v2 = vsel %vm777_vm4, %v766_v60, %v774_v14  ;;  %v784_v59 = vsel %vm777_vm4, %v774_v14, %v766_v60 }
 0x248   : > { %v797_v45 = vmul.f32 %v789_v20, %v780_v2  ;;  %v798_v5 = vmul.f32 %v790_v33, %v784_v59 }
 0x249   : > { %v772_v22 = vpop.permute.xlu0 %771 }
 0x24a   : > { %v805_v19 = vadd.f32 %v797_v45, %v1806_v35  ;;  %v806_v12 = vadd.f32 %v798_v5, %v1808_v54 }
 0x24e   : > { %v821_v21 = vpop.permute.xlu2 %820 }
 0x24f   : > { %v764_v42 = vpop.permute.xlu1 %763 }
 0x250   : > { %v779_v44 = vsel %vm777_vm4, %v764_v42, %v772_v22  ;;  %v783_v35 = vsel %vm777_vm4, %v772_v22, %v764_v42 }
 0x251   : > { %v795_v26 = vmul.f32 %v789_v20, %v779_v44  ;;  %v796_v1 = vmul.f32 %v790_v33, %v783_v35  ;;  %v816_v63 = vpop.permute.xlu0 %815 }
 0x253   : > { %v803_v48 = vadd.f32 %v795_v26, %v1774_v27  ;;  %v804_v7 = vadd.f32 %v796_v1, %v1776_v61 }
 0x255   : > { %v835_v16 = vadd.f32 %v821_v21, %v803_v48  ;;  %v836_v41 = vadd.f32 %v821_v21, %v804_v7 }
 0x256   : > { %v831_v62 = vpop.permute.xlu2 %830 }
 0x257   : > { %v770_v25 = vpop.permute.xlu1 %769 }
 0x258   : > { %v778_v54 = vsel %vm777_vm4, %v762_v52, %v770_v25  ;;  %v782_v50 = vsel %vm777_vm4, %v770_v25, %v762_v52 }
 0x259   : > { %v793_v51 = vmul.f32 %v789_v20, %v778_v54  ;;  %v794_v46 = vmul.f32 %v790_v33, %v782_v50 }
 0x25b   : > { %v801_v15 = vadd.f32 %v793_v51, %v1784_v10  ;;  %v802_v34 = vadd.f32 %v794_v46, %v1786_v43 }
 0x25d   : > { %v833_v31 = vadd.f32 %v816_v63, %v801_v15  ;;  %v834_v56 = vadd.f32 %v816_v63, %v802_v34 }
 0x25f   : > { %v776_v0 = vpop.permute.xlu1 %775 }
 0x260   : > { %v781_v30 = vsel %vm777_vm4, %v768_v9, %v776_v0  ;;  %v785_v57 = vsel %vm777_vm4, %v776_v0, %v768_v9 }
 0x261   : > { %v799_v11 = vmul.f32 %v789_v20, %v781_v30  ;;  %v800_v13 = vmul.f32 %v790_v33, %v785_v57 }
 0x263   : > { %v807_v43 = vadd.f32 %v799_v11, %v1814_v3  ;;  %v808_v52 = vadd.f32 %v800_v13, %v1816_v38 }
 0x265   : > { %v839_v25 = vadd.f32 %v831_v62, %v807_v43  ;;  %v840_v21 = vadd.f32 %v831_v62, %v808_v52 }
 0x267   : > { %v826_v24 = vpop.permute.xlu1 %825 }
 0x268   : > { %v837_v32 = vadd.f32 %v826_v24, %v805_v19  ;;  %v838_v28 = vadd.f32 %v826_v24, %v806_v12 }
 0x28b   : > { %v924_v4 = vpop.permute.xlu2 %923 }
 0x28c   : > { %v935_v39 = vadd.f32 %v924_v4, %v837_v32  ;;  %v936_v29 = vadd.f32 %v924_v4, %v838_v28 }
 0x28e   : > { %v943_v58 = vmul.f32 0.5, %v935_v39  ;;  %v944_v6 = vmul.f32 0.5, %v936_v29 }
 0x290   : > { %1176 = vtanh.f32 %v943_v58 }
 0x291   : > { %1178 = vtanh.f32 %v944_v6 }
 0x296   : > { %v1177_v49 = vpop.eup %1176 }
 0x297   : > { %v1179_v55 = vpop.eup %1178  ;;  %v959_v8 = vmul.f32 0.5, %v1177_v49 }
 0x298   : > { %v960_v17 = vmul.f32 0.5, %v1179_v55 }
 0x299   : > { %v967_v37 = vadd.f32 0.5, %v959_v8 }
 0x29a   : > { %v968_v36 = vadd.f32 0.5, %v960_v17 }
 0x29b   : > { %975 = vst [vmem:[%s1941_s25 + $0x20] sm:$0xff] %v967_v37 }
 0x29c   : > { %976 = vst [vmem:[%s1941_s25 + $0x28] sm:$0xff] %v968_v36 }
 0x2a3   : > { %v919_v27 = vpop.permute.xlu0 %918 }
 0x2a4   : > { %v914_v53 = vpop.permute.xlu1 %913  ;;  %v933_v47 = vadd.f32 %v919_v27, %v835_v16  ;;  %v934_v10 = vadd.f32 %v919_v27, %v836_v41 }
 0x2a5   : > { %v931_v23 = vadd.f32 %v914_v53, %v833_v31  ;;  %v932_v61 = vadd.f32 %v914_v53, %v834_v56 }
 0x2a6   : > { %v941_v40 = vmul.f32 0.5, %v933_v47  ;;  %v942_v9 = vmul.f32 0.5, %v934_v10 }
 0x2a7   : > { %v939_v42 = vmul.f32 0.5, %v931_v23  ;;  %v940_v14 = vmul.f32 0.5, %v932_v61 }
 0x2a9   : > { %1180 = vtanh.f32 %v939_v42 }
 0x2aa   : > { %1182 = vtanh.f32 %v940_v14 }
 0x2ab   : > { %1184 = vtanh.f32 %v941_v40 }
 0x2ac   : > { %1186 = vtanh.f32 %v942_v9  ;;  %v929_v18 = vpop.permute.xlu1 %928 }
 0x2ad   : > { %v937_v0 = vadd.f32 %v929_v18, %v839_v25  ;;  %v938_v60 = vadd.f32 %v929_v18, %v840_v21 }
 0x2af   : > { %v1181_v20 = vpop.eup %1180  ;;  %v945_v33 = vmul.f32 0.5, %v937_v0  ;;  %v946_v3 = vmul.f32 0.5, %v938_v60 }
 0x2b0   : > { %v1183_v38 = vpop.eup %1182  ;;  %v955_v2 = vmul.f32 0.5, %v1181_v20 }
 0x2b1   : > { %v1185_v59 = vpop.eup %1184  ;;  %v956_v45 = vmul.f32 0.5, %v1183_v38  ;;  %1188 = vtanh.f32 %v945_v33 }
 0x2b2   : > { %v1187_v62 = vpop.eup %1186  ;;  %v963_v5 = vadd.f32 0.5, %v955_v2  ;;  %v957_v24 = vmul.f32 0.5, %v1185_v59  ;;  %1190 = vtanh.f32 %v946_v3 }
 0x2b3   : > { %v964_v19 = vadd.f32 0.5, %v956_v45  ;;  %v958_v12 = vmul.f32 0.5, %v1187_v62 }
 0x2b4   : > { %971 = vst [vmem:[%s1941_s25] sm:$0xff] %v963_v5  ;;  %v965_v32 = vadd.f32 0.5, %v957_v24 }
 0x2b5   : > { %972 = vst [vmem:[%s1941_s25 + $0x8] sm:$0xff] %v964_v19  ;;  %v966_v28 = vadd.f32 0.5, %v958_v12 }
 0x2b6   : > { %973 = vst [vmem:[%s1941_s25 + $0x10] sm:$0xff] %v965_v32 }
 0x2b7   : > { %v1189_v4 = vpop.eup %1188  ;;  %974 = vst [vmem:[%s1941_s25 + $0x18] sm:$0xff] %v966_v28 }
 0x2b8   : > { %v1191_v39 = vpop.eup %1190  ;;  %v961_v29 = vmul.f32 0.5, %v1189_v4 }
 0x2b9   : > { %v962_v58 = vmul.f32 0.5, %v1191_v39 }
 0x2ba   : > { %v969_v6 = vadd.f32 0.5, %v961_v29 }
 0x2bb   : > { %v970_v22 = vadd.f32 0.5, %v962_v58 }
 0x2bc   : > { %977 = vst [vmem:[%s1941_s25 + $0x30] sm:$0xff] %v969_v6 }
 0x2bd   : > { %978 = vst [vmem:[%s1941_s25 + $0x38] sm:$0xff] %v970_v22 }
 0x2be   : > { %1249 = shalt.err (!%p1246_p4)
}
 0x2bf   : > { %s1305_s14 = smov 256  }
 0x2c0   : > { %1088 = dma.vmem_to_hbm [thread:$0]  (%p1406_p11), %s993_s23, 1024, %s995_s13, %s980_s15, %s1305_s14, %s1305_s14, %s1301_s20  }
 0x2c1 PF: > { %s1009_s25 = sand.u32 1, %s1276_s30   ;;  %p2017_p7 = scmp.ge.s32.totalorder %s1288_s12, 2 }
 0x2c2   : > { %s1010_s19 = scalar_lea.sflag [#allocation4], %s1009_s25 }
 0x2c3   : > { %p1095_p5 = pnand %p2017_p7, %p1410_p12 }
 0x2c5   : > { %p1096_p8 = pneg %p1095_p5 }
 0x2c7   : > { %1271 = dma.done.wait (%p1096_p8), %s1010_s19, 1024  }
 0x2c8   : > { %1273 = vsyncadd (%p1096_p8), %s1010_s19, 4294966272  ;;  %s2018_s12 = sld [smem:[#allocation9_spill]]  ;;  %s2021_s30 = smov %s1280_s10 }
 0x2c9   : > { %s2019_s26 = sld [smem:[#allocation8_spill]] }
 0x2ca   : > { %s2020_s11 = sld [smem:[#allocation10_spill]] }
 0x2ce   : > { %p22_p10 = scmp.ge.s32.totalorder %s2018_s12, 4  }
 0x2cf   : > { %s2022_s10 = smov %s2019_s26 }
 0x2d0   :  { %24 = sbr.rel (!%p22_p10) target bundleno = 5 (0x5), region = 103 }
 0x2d5   :  { %1016 = vsyncpa [#allocation3], 1 }
 0x2d6   :  { %1018 = vsyncpa [#allocation3 + $0x1], 1 }
 0x2d7   :  { %1019 = vsyncpa [#allocation4], 1 }
 0x2d8   :  { %1021 = vsyncpa [#allocation4 + $0x1], 1 }

</bundles_post_ra>
